<compile_context>
chip_gen: v5e
topology: v5e:2x2
jax: 0.10.0
libtpu: 0.0.40
codegen_flags: <defaults>
</compile_context>

<pallas_src>
import functools

import jax
import jax.numpy as jnp
from jax.experimental import pallas as pl
from jax.experimental.pallas import tpu as pltpu

LN_EPS = 1e-5  # torch nn.LayerNorm default


def _round_up(x, m):
    return (x + m - 1) // m * m


# ----------------------------------------------------------------------------
# Kernels
# ----------------------------------------------------------------------------
def _expert2_kernel(x_ref, w1_ref, b1_ref, w2_ref, b2_ref, g_ref, beta_ref, o_ref,
                    *, d_in, eps):
    """Weight-resident path: whole W1/W2 live in VMEM; grid over batch tiles."""
    x_bf = x_ref[...]                       # (tb, dp_in) bf16
    x_f32 = x_bf.astype(jnp.float32)

    # fc1 on the MXU (bf16 operands, f32 accumulation) + bias, then gate.
    h = jnp.dot(x_bf, w1_ref[...], preferred_element_type=jnp.float32) + b1_ref[...]
    h = h * x_f32                           # padded x lanes are 0 -> h is 0 there

    # LayerNorm over true d_in lanes; fused one-pass sum / sum-of-squares.
    inv_n = jnp.float32(1.0 / d_in)
    mean = jnp.sum(h, axis=-1, keepdims=True) * inv_n
    var = jnp.maximum(jnp.sum(h * h, axis=-1, keepdims=True) * inv_n - mean * mean, 0.0)
    hn = (h - mean) * jax.lax.rsqrt(var + eps)
    hn = hn * g_ref[...] + beta_ref[...]    # padded gamma/beta lanes are 0

    # fc2 on the MXU + bias.
    out = jnp.dot(hn.astype(jnp.bfloat16), w2_ref[...],
                  preferred_element_type=jnp.float32) + b2_ref[...]
    o_ref[...] = out.astype(o_ref.dtype)


def _expert2_ksplit_kernel(x_ref, w1_ref, b1_ref, w2_ref, b2_ref, g_ref, beta_ref,
                           o_ref, acc_ref, *, d_in, eps, tk):
    """K-split path: fc1 contraction streamed over the trailing grid axis."""
    k = pl.program_id(1)

    @pl.when(k == 0)
    def _():
        acc_ref[...] = jnp.zeros_like(acc_ref)

    # Partial fc1: x[:, k*tk:(k+1)*tk] @ W1[k*tk:(k+1)*tk, :]  (f32 accumulate).
    start = pl.multiple_of(k * tk, 128)
    x_chunk = x_ref[:, pl.ds(start, tk)]
    acc_ref[...] += jnp.dot(x_chunk, w1_ref[...], preferred_element_type=jnp.float32)

    @pl.when(k == pl.num_programs(1) - 1)
    def _():
        x_f32 = x_ref[...].astype(jnp.float32)
        h = (acc_ref[...] + b1_ref[...]) * x_f32    # gate; padded lanes stay 0
        inv_n = jnp.float32(1.0 / d_in)
        mean = jnp.sum(h, axis=-1, keepdims=True) * inv_n
        var = jnp.maximum(jnp.sum(h * h, axis=-1, keepdims=True) * inv_n - mean * mean, 0.0)
        hn = (h - mean) * jax.lax.rsqrt(var + eps)
        hn = hn * g_ref[...] + beta_ref[...]
        out = jnp.dot(hn.astype(jnp.bfloat16), w2_ref[...],
                      preferred_element_type=jnp.float32) + b2_ref[...]
        o_ref[...] = out.astype(o_ref.dtype)


# ----------------------------------------------------------------------------
# Wrapper (caches padded bf16 weights at construction; pads x per call)
# ----------------------------------------------------------------------------
class Expert2:
    def __init__(self, w1, b1, w2, b2, gamma, beta, *, block_b=512, out_dtype=None,
                 force_k_split=False, k_tile=512):
        d_in = w1.shape[0]
        d_out = w2.shape[1]
        assert w1.shape == (d_in, d_in) and w2.shape == (d_in, d_out)

        dp_in = _round_up(d_in, 128)
        dp_out = _round_up(d_out, 128)
        f32, bf16 = jnp.float32, jnp.bfloat16

        # Pad + cast ONCE (hoisted out of the forward path).  Zero padding is
        # mathematically exact (see kernel comments).
        if d_in == dp_in:
            w1p = w1.astype(bf16)
        else:
            w1p = jnp.zeros((dp_in, dp_in), bf16).at[:d_in, :d_in].set(w1.astype(bf16))
        if d_in == dp_in and d_out == dp_out:
            w2p = w2.astype(bf16)
        else:
            w2p = jnp.zeros((dp_in, dp_out), bf16).at[:d_in, :d_out].set(w2.astype(bf16))

        b1p = jnp.zeros((1, dp_in), f32).at[:, :d_in].set(b1.reshape(1, d_in).astype(f32))
        b2p = jnp.zeros((1, dp_out), f32).at[:, :d_out].set(b2.reshape(1, d_out).astype(f32))
        gp = jnp.zeros((1, dp_in), f32).at[:, :d_in].set(gamma.reshape(1, d_in).astype(f32))
        betp = jnp.zeros((1, dp_in), f32).at[:, :d_in].set(beta.reshape(1, d_in).astype(f32))

        self.w1, self.b1, self.w2, self.b2, self.gamma, self.beta = w1p, b1p, w2p, b2p, gp, betp
        self.d_in, self.d_out, self.dp_in, self.dp_out = d_in, d_out, dp_in, dp_out
        self.block_b = block_b
        self.out_dtype = out_dtype
        self.force_k_split = force_k_split

        # K-tile for the K-split path (must divide dp_in; both are 128-multiples).
        tk = min(max(128, _round_up(k_tile, 128)), dp_in)
        while dp_in % tk:
            tk -= 128
        self.tk = tk

    def __call__(self, x):
        B, d_in = x.shape
        assert d_in == self.d_in
        dp_in, dp_out = self.dp_in, self.dp_out
        bf16 = jnp.bfloat16
        out_dtype = self.out_dtype if self.out_dtype is not None else x.dtype
        out_bytes = jnp.dtype(out_dtype).itemsize

        # ---- batch tiling: multiple of 16 (bf16 sublanes), >= 2 blocks when possible
        tb_cap = max(16, _round_up(self.block_b, 16))
        if B >= 32:
            tb = min(_round_up((B + 1) // 2, 16), tb_cap)
        else:
            tb = min(_round_up(B, 16), tb_cap)

        # ---- per-generation VMEM budget (physical capacity minus ~15% headroom)
        try:
            vmem_cap = int(pltpu.get_tpu_info().vmem_capacity_bytes)
        except Exception:
            vmem_cap = 64 * 1024 * 1024
        budget = int(0.85 * vmem_cap)

        vec_bytes = (3 * dp_in + dp_out) * 4
        w1_bytes = dp_in * dp_in * 2
        w2_bytes = dp_in * dp_out * 2

        def simple_bytes(tb_):
            # single-buffered weights/vectors + double-buffered x / out tiles
            return (w1_bytes + w2_bytes + vec_bytes
                    + 2 * tb_ * dp_in * 2 + 2 * tb_ * dp_out * out_bytes)

        def ksplit_bytes(tb_):
            return (2 * self.tk * dp_in * 2 + w2_bytes + vec_bytes
                    + 2 * tb_ * dp_in * 2 + 2 * tb_ * dp_out * out_bytes
                    + tb_ * dp_in * 4)

        tb0 = tb
        use_ksplit = self.force_k_split
        if not use_ksplit:
            while tb > 16 and simple_bytes(tb) > budget:
                tb = max(16, _round_up(tb // 2, 16))
            if simple_bytes(tb) > budget:
                use_ksplit = True
                tb = tb0
        if use_ksplit:
            while tb > 16 and ksplit_bytes(tb) > budget:
                tb = max(16, _round_up(tb // 2, 16))
            # TODO(synk): if D_out is also huge (resident W2 alone blows the budget),
            # stream W2 over an output-column grid axis as well.

        bp = _round_up(B, tb)
        n_blocks = bp // tb

        # ---- pad x directly in bf16 (fast path when already aligned)
        if B == bp and d_in == dp_in:
            xp = x.astype(bf16)
        else:
            xp = jnp.zeros((bp, dp_in), bf16).at[:B, :d_in].set(x.astype(bf16))

        need = ksplit_bytes(tb) if use_ksplit else simple_bytes(tb)
        vmem_limit = int(min(budget, max(need + (4 << 20), 16 << 20)))

        cost = pl.CostEstimate(
            flops=2 * B * d_in * (d_in + self.d_out),
            transcendentals=B,
            bytes_accessed=(xp.size * 2
                            + (w1_bytes * (n_blocks if use_ksplit else 1))
                            + w2_bytes + vec_bytes
                            + bp * dp_out * out_bytes),
        )

        resident = pl.Buffered(1)  # grid-invariant operands: single buffer

        if not use_ksplit:
            kernel = functools.partial(_expert2_kernel, d_in=d_in, eps=LN_EPS)
            grid_spec = pltpu.PrefetchScalarGridSpec(
                num_scalar_prefetch=0,
                grid=(n_blocks,),
                in_specs=[
                    pl.BlockSpec((tb, dp_in), lambda i: (i, 0)),                     # x (pipelined)
                    pl.BlockSpec((dp_in, dp_in), lambda i: (0, 0), pipeline_mode=resident),   # W1
                    pl.BlockSpec((1, dp_in), lambda i: (0, 0), pipeline_mode=resident),       # b1
                    pl.BlockSpec((dp_in, dp_out), lambda i: (0, 0), pipeline_mode=resident),  # W2
                    pl.BlockSpec((1, dp_out), lambda i: (0, 0), pipeline_mode=resident),      # b2
                    pl.BlockSpec((1, dp_in), lambda i: (0, 0), pipeline_mode=resident),       # gamma
                    pl.BlockSpec((1, dp_in), lambda i: (0, 0), pipeline_mode=resident),       # beta
                ],
                out_specs=pl.BlockSpec((tb, dp_out), lambda i: (i, 0)),
            )
            dim_sem = ("parallel",)
        else:
            tk = self.tk
            n_k = dp_in // tk
            kernel = functools.partial(_expert2_ksplit_kernel, d_in=d_in, eps=LN_EPS, tk=tk)
            grid_spec = pltpu.PrefetchScalarGridSpec(
                num_scalar_prefetch=0,
                grid=(n_blocks, n_k),
                in_specs=[
                    pl.BlockSpec((tb, dp_in), lambda i, k: (i, 0)),                  # full x row tile
                    pl.BlockSpec((tk, dp_in), lambda i, k: (k, 0)),                  # W1 k-slab (streamed)
                    pl.BlockSpec((1, dp_in), lambda i, k: (0, 0), pipeline_mode=resident),
                    pl.BlockSpec((dp_in, dp_out), lambda i, k: (0, 0), pipeline_mode=resident),
                    pl.BlockSpec((1, dp_out), lambda i, k: (0, 0), pipeline_mode=resident),
                    pl.BlockSpec((1, dp_in), lambda i, k: (0, 0), pipeline_mode=resident),
                    pl.BlockSpec((1, dp_in), lambda i, k: (0, 0), pipeline_mode=resident),
                ],
                out_specs=pl.BlockSpec((tb, dp_out), lambda i, k: (i, 0)),
                scratch_shapes=[pltpu.VMEM((tb, dp_in), jnp.float32)],               # fc1 accumulator
            )
            dim_sem = ("parallel", "arbitrary")

        out_padded = pl.pallas_call(
            kernel,
            out_shape=jax.ShapeDtypeStruct((bp, dp_out), out_dtype),
            grid_spec=grid_spec,
            compiler_params=pltpu.CompilerParams(
                dimension_semantics=dim_sem,
                vmem_limit_bytes=vmem_limit,
            ),
            cost_estimate=cost,
        )(xp, self.w1, self.b1, self.w2, self.b2, self.gamma, self.beta)

        if bp == B and dp_out == self.d_out:
            return out_padded
        return out_padded[:B, :self.d_out]


def expert2_forward(x, w1, b1, w2, b2, gamma, beta, **kwargs):
    """One-shot convenience wrapper (re-pads weights every call; prefer Expert2)."""
    return Expert2(w1, b1, w2, b2, gamma, beta, **kwargs)(x)


# ----------------------------------------------------------------------------
# Pure-JAX references
# ----------------------------------------------------------------------------
def reference_forward(x, w1, b1, w2, b2, gamma, beta, *, match_kernel_precision=False):
    if match_kernel_precision:
        xb = x.astype(jnp.bfloat16)
        h = jnp.dot(xb, w1.astype(jnp.bfloat16), preferred_element_type=jnp.float32) + b1
        h = h * xb.astype(jnp.float32)
    else:
        h = x @ w1 + b1
        h = h * x
    mean = jnp.mean(h, axis=-1, keepdims=True)
    var = jnp.mean((h - mean) ** 2, axis=-1, keepdims=True)
    hn = (h - mean) * jax.lax.rsqrt(var + LN_EPS)
    hn = hn * gamma + beta
    if match_kernel_precision:
        return jnp.dot(hn.astype(jnp.bfloat16), w2.astype(jnp.bfloat16),
                       preferred_element_type=jnp.float32) + b2
    return hn @ w2 + b2


if __name__ == "__main__":
    key = jax.random.PRNGKey(0)

    def make_params(k, d_in, d_out):
        kw1, kb1, kw2, kb2, kg, kbt = jax.random.split(k, 6)
        w1 = jax.random.normal(kw1, (d_in, d_in), jnp.float32) / jnp.sqrt(d_in)
        b1 = jax.random.normal(kb1, (d_in,), jnp.float32) * 0.1
        w2 = jax.random.normal(kw2, (d_in, d_out), jnp.float32) / jnp.sqrt(d_in)
        b2 = jax.random.normal(kb2, (d_out,), jnp.float32) * 0.1
        gamma = 1.0 + 0.1 * jax.random.normal(kg, (d_in,), jnp.float32)
        beta = 0.1 * jax.random.normal(kbt, (d_in,), jnp.float32)
        return w1, b1, w2, b2, gamma, beta

    # 1) Small shape, weight-resident path.
    B, D_in, D_out = 8, 32, 16
    kx, kp, krest = jax.random.split(key, 3)
    x = jax.random.normal(kx, (B, D_in), jnp.float32)
    params = make_params(kp, D_in, D_out)
    expert = Expert2(*params)
    out = jax.block_until_ready(expert(x))
    assert out.shape == (B, D_out)
    ref_m = reference_forward(x, *params, match_kernel_precision=True)
    assert jnp.allclose(out, ref_m, atol=5e-3, rtol=5e-3), "mismatch vs matched ref (resident path)"
    ref_f = reference_forward(x, *params)
    assert jnp.allclose(out, ref_f, atol=1e-1, rtol=1e-1), "mismatch vs f32 ref (resident path)"

    # 2) Exercise the K-split (large-D_in fallback) path on a small, unaligned shape.
    B2, D_in2, D_out2 = 48, 192, 96
    kx2, kp2 = jax.random.split(krest)
    x2 = jax.random.normal(kx2, (B2, D_in2), jnp.float32)
    params2 = make_params(kp2, D_in2, D_out2)
    expert_ks = Expert2(*params2, force_k_split=True, k_tile=128)
    out2 = jax.block_until_ready(expert_ks(x2))
    assert out2.shape == (B2, D_out2)
    ref_m2 = reference_forward(x2, *params2, match_kernel_precision=True)
    assert jnp.allclose(out2, ref_m2, atol=5e-3, rtol=5e-3), "mismatch vs matched ref (k-split path)"
    ref_f2 = reference_forward(x2, *params2)
    assert jnp.allclose(out2, ref_f2, atol=1e-1, rtol=1e-1), "mismatch vs f32 ref (k-split path)"

    print("KERNEL_OK")
</pallas_src>

<mosaic_0001>
module attributes {stable_mosaic.version = 11 : i64} {
  func.func @_expert2_kernel(%arg0: i32, %arg1: memref<16x128xbf16, #tpu.memory_space<vmem>>, %arg2: memref<128x128xbf16, #tpu.memory_space<vmem>>, %arg3: memref<1x128xf32, #tpu.memory_space<vmem>>, %arg4: memref<128x128xbf16, #tpu.memory_space<vmem>>, %arg5: memref<1x128xf32, #tpu.memory_space<vmem>>, %arg6: memref<1x128xf32, #tpu.memory_space<vmem>>, %arg7: memref<1x128xf32, #tpu.memory_space<vmem>>, %arg8: memref<16x128xf32, #tpu.memory_space<vmem>>) attributes {dimension_semantics = [#tpu.dimension_semantics<parallel>], iteration_bounds = array<i64: 1>, scalar_prefetch = 0 : i64, scratch_operands = 0 : i64, tpu.core_type = #tpu.core_type<tc>, window_params = [{transform_indices = @transform_0, window_bounds = array<i64: 16, 128>}, {pipeline_mode = #tpu.pipeline_mode<synchronous>, transform_indices = @transform_1, window_bounds = array<i64: 128, 128>}, {pipeline_mode = #tpu.pipeline_mode<synchronous>, transform_indices = @transform_2, window_bounds = array<i64: 1, 128>}, {pipeline_mode = #tpu.pipeline_mode<synchronous>, transform_indices = @transform_3, window_bounds = array<i64: 128, 128>}, {pipeline_mode = #tpu.pipeline_mode<synchronous>, transform_indices = @transform_4, window_bounds = array<i64: 1, 128>}, {pipeline_mode = #tpu.pipeline_mode<synchronous>, transform_indices = @transform_5, window_bounds = array<i64: 1, 128>}, {pipeline_mode = #tpu.pipeline_mode<synchronous>, transform_indices = @transform_6, window_bounds = array<i64: 1, 128>}, {transform_indices = @transform_7, window_bounds = array<i64: 16, 128>}]} {
    %c0 = arith.constant 0 : index
    %c0_0 = arith.constant 0 : index
    %0 = vector.load %arg1[%c0, %c0_0] : memref<16x128xbf16, #tpu.memory_space<vmem>>, vector<16x128xbf16>
    %1 = arith.extf %0 : vector<16x128xbf16> to vector<16x128xf32>
    %c0_1 = arith.constant 0 : index
    %c0_2 = arith.constant 0 : index
    %2 = vector.load %arg2[%c0_1, %c0_2] : memref<128x128xbf16, #tpu.memory_space<vmem>>, vector<128x128xbf16>
    %cst = arith.constant dense<0.000000e+00> : vector<16x128xf32>
    %3 = tpu.matmul %0, %2, %cst {dimension_numbers = #tpu.dot_dimension_numbers<[1], [0], [0], [1], [0, 0, 1, 1], [], []>} : vector<16x128xbf16>, vector<128x128xbf16>, vector<16x128xf32> -> vector<16x128xf32>
    %c0_3 = arith.constant 0 : index
    %c0_4 = arith.constant 0 : index
    %4 = vector.load %arg3[%c0_3, %c0_4] : memref<1x128xf32, #tpu.memory_space<vmem>>, vector<1x128xf32>
    %5 = vector.broadcast %4 : vector<1x128xf32> to vector<16x128xf32>
    %6 = arith.addf %3, %5 : vector<16x128xf32>
    %7 = arith.mulf %6, %1 : vector<16x128xf32>
    %cst_5 = arith.constant dense<0.000000e+00> : vector<16xf32>
    %8 = vector.multi_reduction <add>, %7, %cst_5 [1] : vector<16x128xf32> to vector<16xf32>
    %9 = vector.shape_cast %8 : vector<16xf32> to vector<16x1xf32>
    %cst_6 = arith.constant 3.125000e-02 : f32
    %10 = vector.broadcast %cst_6 : f32 to vector<16x1xf32>
    %11 = arith.mulf %9, %10 : vector<16x1xf32>
    %12 = arith.mulf %7, %7 : vector<16x128xf32>
    %cst_7 = arith.constant dense<0.000000e+00> : vector<16xf32>
    %13 = vector.multi_reduction <add>, %12, %cst_7 [1] : vector<16x128xf32> to vector<16xf32>
    %14 = vector.shape_cast %13 : vector<16xf32> to vector<16x1xf32>
    %cst_8 = arith.constant 3.125000e-02 : f32
    %15 = vector.broadcast %cst_8 : f32 to vector<16x1xf32>
    %16 = arith.mulf %14, %15 : vector<16x1xf32>
    %17 = arith.mulf %11, %11 : vector<16x1xf32>
    %18 = arith.subf %16, %17 : vector<16x1xf32>
    %cst_9 = arith.constant 0.000000e+00 : f32
    %19 = vector.broadcast %cst_9 : f32 to vector<16x1xf32>
    %20 = arith.maximumf %18, %19 : vector<16x1xf32>
    %21 = vector.broadcast %11 : vector<16x1xf32> to vector<16x128xf32>
    %22 = arith.subf %7, %21 : vector<16x128xf32>
    %cst_10 = arith.constant 9.99999974E-6 : f32
    %23 = vector.broadcast %cst_10 : f32 to vector<16x1xf32>
    %24 = arith.addf %20, %23 : vector<16x1xf32>
    %25 = math.rsqrt %24 : vector<16x1xf32>
    %26 = vector.broadcast %25 : vector<16x1xf32> to vector<16x128xf32>
    %27 = arith.mulf %22, %26 : vector<16x128xf32>
    %c0_11 = arith.constant 0 : index
    %c0_12 = arith.constant 0 : index
    %28 = vector.load %arg6[%c0_11, %c0_12] : memref<1x128xf32, #tpu.memory_space<vmem>>, vector<1x128xf32>
    %29 = vector.broadcast %28 : vector<1x128xf32> to vector<16x128xf32>
    %30 = arith.mulf %27, %29 : vector<16x128xf32>
    %c0_13 = arith.constant 0 : index
    %c0_14 = arith.constant 0 : index
    %31 = vector.load %arg7[%c0_13, %c0_14] : memref<1x128xf32, #tpu.memory_space<vmem>>, vector<1x128xf32>
    %32 = vector.broadcast %31 : vector<1x128xf32> to vector<16x128xf32>
    %33 = arith.addf %30, %32 : vector<16x128xf32>
    %34 = arith.truncf %33 : vector<16x128xf32> to vector<16x128xbf16>
    %c0_15 = arith.constant 0 : index
    %c0_16 = arith.constant 0 : index
    %35 = vector.load %arg4[%c0_15, %c0_16] : memref<128x128xbf16, #tpu.memory_space<vmem>>, vector<128x128xbf16>
    %cst_17 = arith.constant dense<0.000000e+00> : vector<16x128xf32>
    %36 = tpu.matmul %34, %35, %cst_17 {dimension_numbers = #tpu.dot_dimension_numbers<[1], [0], [0], [1], [0, 0, 1, 1], [], []>} : vector<16x128xbf16>, vector<128x128xbf16>, vector<16x128xf32> -> vector<16x128xf32>
    %c0_18 = arith.constant 0 : index
    %c0_19 = arith.constant 0 : index
    %37 = vector.load %arg5[%c0_18, %c0_19] : memref<1x128xf32, #tpu.memory_space<vmem>>, vector<1x128xf32>
    %38 = vector.broadcast %37 : vector<1x128xf32> to vector<16x128xf32>
    %39 = arith.addf %36, %38 : vector<16x128xf32>
    %c0_20 = arith.constant 0 : index
    %c0_21 = arith.constant 0 : index
    %40 = vector.load %arg8[%c0_20, %c0_21] : memref<16x128xf32, #tpu.memory_space<vmem>>, vector<16x128xf32>
    tpu.vector_store %arg8[%c0_20, %c0_21], %39 {strides = array<i32>} : memref<16x128xf32, #tpu.memory_space<vmem>>, vector<16x128xf32>,
    return
  }
  func.func @transform_0(%arg0: i32) -> (i32, i32) {
    %c0_i32 = arith.constant 0 : i32
    %c0_i32_0 = arith.constant 0 : i32
    return %arg0, %c0_i32 : i32, i32
  }
  func.func @transform_1(%arg0: i32) -> (i32, i32) {
    %c0_i32 = arith.constant 0 : i32
    %c0_i32_0 = arith.constant 0 : i32
    %c0_i32_1 = arith.constant 0 : i32
    return %c0_i32, %c0_i32_0 : i32, i32
  }
  func.func @transform_2(%arg0: i32) -> (i32, i32) {
    %c0_i32 = arith.constant 0 : i32
    %c0_i32_0 = arith.constant 0 : i32
    %c0_i32_1 = arith.constant 0 : i32
    return %c0_i32, %c0_i32_0 : i32, i32
  }
  func.func @transform_3(%arg0: i32) -> (i32, i32) {
    %c0_i32 = arith.constant 0 : i32
    %c0_i32_0 = arith.constant 0 : i32
    %c0_i32_1 = arith.constant 0 : i32
    return %c0_i32, %c0_i32_0 : i32, i32
  }
  func.func @transform_4(%arg0: i32) -> (i32, i32) {
    %c0_i32 = arith.constant 0 : i32
    %c0_i32_0 = arith.constant 0 : i32
    %c0_i32_1 = arith.constant 0 : i32
    return %c0_i32, %c0_i32_0 : i32, i32
  }
  func.func @transform_5(%arg0: i32) -> (i32, i32) {
    %c0_i32 = arith.constant 0 : i32
    %c0_i32_0 = arith.constant 0 : i32
    %c0_i32_1 = arith.constant 0 : i32
    return %c0_i32, %c0_i32_0 : i32, i32
  }
  func.func @transform_6(%arg0: i32) -> (i32, i32) {
    %c0_i32 = arith.constant 0 : i32
    %c0_i32_0 = arith.constant 0 : i32
    %c0_i32_1 = arith.constant 0 : i32
    return %c0_i32, %c0_i32_0 : i32, i32
  }
  func.func @transform_7(%arg0: i32) -> (i32, i32) {
    %c0_i32 = arith.constant 0 : i32
    %c0_i32_0 = arith.constant 0 : i32
    return %arg0, %c0_i32 : i32, i32
  }
}

</mosaic_0001>

<bundles_post_ra>
// kernel: tpu_custom_call.1
= control target key start
LH: loop header
LB: loop body
LE: loop exit
PB: predicated region body
PF: predicated region fallthrough
CT: control target
= control target key end

     0   :  { %12 = vsyncpa [#allocation3], 0  ;;  %s618_s0 = inlined_call_operand.hbm [shape: bf16[16,128], index: 0, kind: input, shape index: {}]   ;;  %s619_s1 = inlined_call_operand.hbm [shape: bf16[128,128], index: 1, kind: input, shape index: {}]   ;;  %s620_s2 = inlined_call_operand.vmem [shape: f32[1,128], index: 2, kind: input, shape index: {}]   ;;  %s621_s3 = inlined_call_operand.hbm [shape: bf16[128,128], index: 3, kind: input, shape index: {}]   ;;  %s622_s4 = inlined_call_operand.vmem [shape: f32[1,128], index: 4, kind: input, shape index: {}]   ;;  %s623_s5 = inlined_call_operand.vmem [shape: f32[1,128], index: 5, kind: input, shape index: {}]   ;;  %s624_s6 = inlined_call_operand.vmem [shape: f32[1,128], index: 6, kind: input, shape index: {}]   ;;  %s625_s7 = inlined_call_operand.hbm [shape: f32[16,128], index: 7, kind: output, shape index: {}]  }
   0x1   :  { %13 = vsyncpa [#allocation6], 0 }
   0x2   :  { %14 = vsyncpa [#allocation4], 0  ;;  %s32_s26 = sshll.u32 %s619_s1, 4  ;;  %s534_s27 = smov [#allocation5]   ;;  %s33_s26 = int_to_ptr.hbm [resolvable:$true] %s32_s26 }
   0x3   :  { %s34_s28 = sshll.u32 %s534_s27, 4  ;;  %s19_s8 = sshll.u32 %s618_s0, 4  ;;  %s35_s28 = int_to_ptr.vmem [resolvable:$true] %s34_s28  ;;  %s20_s8 = int_to_ptr.hbm [resolvable:$true] %s19_s8 }
   0x4   :  { %s535_s9 = smov 64   ;;  %s536_s10 = smov 4  }
   0x5   :  { %40 = dma.hbm_to_vmem [thread:$0]  %s33_s26, 1024, %s35_s28, [#allocation6], %s535_s9, %s535_s9, %s536_s10  }
   0x6   :  { %s537_s11 = smov [#allocation2]   ;;  %s47_s15 = sshll.u32 %s621_s3, 4  ;;  %s48_s15 = int_to_ptr.hbm [resolvable:$true] %s47_s15 }
   0x7   :  { %s21_s12 = sshll.u32 %s537_s11, 4  ;;  %s538_s1 = smov [#allocation7]   ;;  %s22_s12 = int_to_ptr.vmem [resolvable:$true] %s21_s12 }
   0x8   :  { %27 = dma.hbm_to_vmem [thread:$0]  %s20_s8, 128, %s22_s12, [#allocation3], %s535_s9, %s535_s9, %s536_s10  }
   0x9   :  { %s49_s16 = sshll.u32 %s538_s1, 4  ;;  %s50_s16 = int_to_ptr.vmem [resolvable:$true] %s49_s16 }
   0xa   :  { %55 = dma.hbm_to_vmem [thread:$0]  %s48_s15, 1024, %s50_s16, [#allocation6], %s535_s9, %s535_s9, %s536_s10  }
   0xb   :  { %528 = dma.done.wait [#allocation3], 128  }
   0xc   :  { %529 = vsyncadd [#allocation3], 4294967168 }
   0xd   :  { %530 = dma.done.wait [#allocation6], 2048  }
   0xe   :  { %531 = vsyncadd [#allocation6], 4294965248  ;;  %v407_v0 = vld [vmem:[#allocation5 + $0x38] sm:$0xff]  ;;  %v406_v1 = vld [vmem:[#allocation5 + $0x30] sm:$0xff]  ;;  %s317_s25 = sshll.u32 %s625_s7, 4  ;;  %s541_s26 = smov 8   ;;  %s318_s25 = int_to_ptr.hbm [resolvable:$true] %s317_s25 }
   0xf   :  { %152 = vmatpush.bf16.msra.mxu0 %v407_v0  ;;  %v405_v2 = vld [vmem:[#allocation5 + $0x28] sm:$0xff]  ;;  %v404_v3 = vld [vmem:[#allocation5 + $0x20] sm:$0xff]  ;;  %v403_v4 = vld [vmem:[#allocation5 + $0x18] sm:$0xff] }
  0x10   :  { %v402_v5 = vld [vmem:[#allocation5 + $0x10] sm:$0xff]  ;;  %v401_v6 = vld [vmem:[#allocation5 + $0x8] sm:$0xff]  ;;  %v400_v7 = vld [vmem:[#allocation5] sm:$0xff] }
  0x11   :  { %v399_v8 = vld [vmem:[#allocation2] sm:$0xff]  ;;  %v414_v22 = vld [vmem:[#allocation7 + $0x30] sm:$0xff]  ;;  %v413_v23 = vld [vmem:[#allocation7 + $0x28] sm:$0xff] }
  0x12   :  { %v74_v9 = vld [vmem:[#allocation2] sm:$0xff]   ;;  %v412_v24 = vld [vmem:[#allocation7 + $0x20] sm:$0xff]  ;;  %v410_v28 = vld [vmem:[#allocation7 + $0x10] sm:$0xff] }
  0x13   :  { %153 = vmatpush.bf16.msra.mxu0 %v406_v1  ;;  %v424_v10 = vld [vmem:[%s620_s2] ss:$0 sm:$0xff]  ;;  %v76_v11 = vunpack.c.l.bf16 %v74_v9  ;;  %v77_v16 = vunpack.c.h.bf16 %v74_v9  ;;  %v409_v32 = vld [vmem:[#allocation7 + $0x8] sm:$0xff]  ;;  %v408_v35 = vld [vmem:[#allocation7] sm:$0xff] }
  0x14   :  { %v415_v21 = vld [vmem:[#allocation7 + $0x38] sm:$0xff] }
  0x15   :  { %295 = vmatpush.bf16.msra.mxu1 %v415_v21  ;;  %v411_v25 = vld [vmem:[#allocation7 + $0x18] sm:$0xff] }
  0x16   :  { %v425_v59 = vld [vmem:[%s623_s5] ss:$0 sm:$0xff]  ;;  %s539_s5 = smov [#allocation8]  }
  0x17   :  { %154 = vmatpush.bf16.msra.mxu0 %v405_v2  ;;  %v426_v1 = vld [vmem:[%s624_s6] ss:$0 sm:$0xff]  ;;  %s315_s22 = sshll.u32 %s539_s5, 4  ;;  %s540_s6 = smov 128   ;;  %s316_s22 = int_to_ptr.vmem [resolvable:$true] %s315_s22 }
  0x19   :  { %296 = vmatpush.bf16.msra.mxu1 %v414_v22 }
  0x1b   :  { %155 = vmatpush.bf16.msra.mxu0 %v404_v3 }
  0x1d   :  { %297 = vmatpush.bf16.msra.mxu1 %v413_v23 }
  0x1f   :  { %156 = vmatpush.bf16.msra.mxu0 %v403_v4 }
  0x21   :  { %298 = vmatpush.bf16.msra.mxu1 %v412_v24 }
  0x23   :  { %157 = vmatpush.bf16.msra.mxu0 %v402_v5 }
  0x25   :  { %299 = vmatpush.bf16.msra.mxu1 %v411_v25 }
  0x27   :  { %158 = vmatpush.bf16.msra.mxu0 %v401_v6  ;;  %v427_v6 = vld [vmem:[%s622_s4] ss:$0 sm:$0xff] }
  0x29   :  { %300 = vmatpush.bf16.msra.mxu1 %v410_v28 }
  0x2b   :  { %159 = vmatpush.bf16.msra.mxu0 %v400_v7 }
  0x2d   :  { %301 = vmatpush.bf16.msra.mxu1 %v409_v32 }
  0x2e   :  { %160 = vmatmul.bf16.vlgmr.msra.gmra.mxu0 %v399_v8 }
  0x31   :  { %302 = vmatpush.bf16.msra.mxu1 %v408_v35 }
  0xab   :  { %v161_v12 = vpop.f32.mrf.mxu0 }
  0xac   :  { %v162_v13 = vadd.f32 %v424_v10, %v161_v12 }
  0xae   :  { %v594_v14 = vmul.f32 %v162_v13, %v76_v11 }
  0xb0   :  { %168 = vadd.xlane.f32.xlu0 %v594_v14  ;;  %v174_v15 = vmul.f32 %v594_v14, %v594_v14 }
  0xb2   :  { %176 = vadd.xlane.f32.xlu1 %v174_v15 }
  0xb3   :  { %v163_v17 = vpop.f32.mrf.mxu0 }
  0xb4   :  { %v164_v18 = vadd.f32 %v424_v10, %v163_v17 }
  0xb6   :  { %v599_v19 = vmul.f32 %v164_v18, %v77_v16 }
  0xb8   :  { %170 = vadd.xlane.f32.xlu0 %v599_v19  ;;  %v175_v20 = vmul.f32 %v599_v19, %v599_v19 }
  0xba   :  { %178 = vadd.xlane.f32.xlu1 %v175_v20 }
 0x123   :  { %v169_v26 = vpop.xlane.xlu0 %168 }
 0x124   :  { %v172_v27 = vmul.f32 0.03125, %v169_v26 }
 0x125   :  { %v177_v29 = vpop.xlane.xlu1 %176 }
 0x126   :  { %v182_v30 = vmul.f32 %v172_v27, %v172_v27  ;;  %v180_v31 = vmul.f32 0.03125, %v177_v29  ;;  %v188_v56 = vsub.f32 %v594_v14, %v172_v27 }
 0x128   :  { %v184_v33 = vsub.f32 %v180_v31, %v182_v30 }
 0x12a   :  { %v186_v34 = vmax.f32 %v184_v33, 0.0 }
 0x12b   :  { %v171_v36 = vpop.xlane.xlu0 %170 }
 0x12c   :  { %v190_v37 = vadd.f32 1e-05, %v186_v34  ;;  %v173_v38 = vmul.f32 0.03125, %v171_v36 }
 0x12d   :  { %v179_v39 = vpop.xlane.xlu1 %178 }
 0x12e   :  { %428 = vrsqrt.f32 %v190_v37  ;;  %v183_v40 = vmul.f32 %v173_v38, %v173_v38  ;;  %v181_v41 = vmul.f32 0.03125, %v179_v39  ;;  %vm198_vm1 = vweird.f32 %v190_v37 }
 0x12f   :  { %v189_v61 = vsub.f32 %v599_v19, %v173_v38 }
 0x130   :  { %v185_v42 = vsub.f32 %v181_v41, %v183_v40 }
 0x132   :  { %v187_v43 = vmax.f32 %v185_v42, 0.0 }
 0x134   :  { %v429_v44 = vpop.eup %428  ;;  %v191_v46 = vadd.f32 1e-05, %v187_v43 }
 0x135   :  { %v193_v45 = vmul.f32 %v429_v44, %v190_v37  ;;  %vm199_vm0 = vweird.f32 %v429_v44 }
 0x136   :  { %430 = vrsqrt.f32 %v191_v46  ;;  %vm200_vm2 = vmor %vm198_vm1, %vm199_vm0  ;;  %vm208_vm4 = vweird.f32 %v191_v46 }
 0x137   :  { %v194_v47 = vmul.f32 %v429_v44, %v193_v45 }
 0x139   :  { %v195_v48 = vmul.f32 0.5, %v194_v47 }
 0x13b   :  { %v196_v49 = vsub.f32 1.5, %v195_v48 }
 0x13c   :  { %v431_v50 = vpop.eup %430 }
 0x13d   :  { %v203_v51 = vmul.f32 %v431_v50, %v191_v46  ;;  %v197_v52 = vmul.f32 %v429_v44, %v196_v49  ;;  %vm209_vm3 = vweird.f32 %v431_v50 }
 0x13e   :  { %vm210_vm5 = vmor %vm208_vm4, %vm209_vm3 }
 0x13f   :  { %v204_v53 = vmul.f32 %v431_v50, %v203_v51  ;;  %v201_v55 = vsel %vm200_vm2, %v429_v44, %v197_v52 }
 0x140   :  { %v212_v58 = vmul.f32 %v201_v55, %v188_v56 }
 0x141   :  { %v205_v54 = vmul.f32 0.5, %v204_v53 }
 0x142   :  { %v218_v0 = vmul.f32 %v425_v59, %v212_v58 }
 0x143   :  { %v206_v57 = vsub.f32 1.5, %v205_v54 }
 0x144   :  { %v224_v3 = vadd.f32 %v426_v1, %v218_v0 }
 0x145   :  { %v207_v60 = vmul.f32 %v431_v50, %v206_v57 }
 0x147   :  { %v211_v62 = vsel %vm210_vm5, %v431_v50, %v207_v60 }
 0x148   :  { %v213_v63 = vmul.f32 %v211_v62, %v189_v61 }
 0x14a   :  { %v219_v2 = vmul.f32 %v425_v59, %v213_v63 }
 0x14c   :  { %v225_v4 = vadd.f32 %v426_v1, %v219_v2 }
 0x14e   :  { %v226_v5 = vpack.c.bf16 %v225_v4, %v224_v3 }
 0x150   :  { %303 = vmatmul.bf16.vlgmr.msra.gmra.mxu1 %v226_v5 }
 0x1cd   :  { %v304_v7 = vpop.f32.mrf.mxu1 }
 0x1ce   :  { %v305_v8 = vadd.f32 %v427_v6, %v304_v7 }
 0x1d0   :  { %309 = vst [vmem:[#allocation8] sm:$0xff] %v305_v8 }
 0x1d5   :  { %v306_v9 = vpop.f32.mrf.mxu1 }
 0x1d6   :  { %v307_v10 = vadd.f32 %v427_v6, %v306_v9 }
 0x1d8   :  { %310 = vst [vmem:[#allocation8 + $0x8] sm:$0xff] %v307_v10 }
 0x1d9   :  { %323 = dma.vmem_to_hbm [thread:$0]  %s316_s22, 256, %s318_s25, [#allocation4], %s540_s6, %s540_s6, %s541_s26  }
 0x1da   :  { %532 = dma.done.wait [#allocation4], 256  }
 0x1db   :  { %533 = vsyncadd [#allocation4], 4294967040 }
 0x1dc   :  { %328 = vsyncpa [#allocation3], 1 }
 0x1dd   :  { %329 = vsyncpa [#allocation6], 1 }
 0x1de   :  { %330 = vsyncpa [#allocation4], 1 }

</bundles_post_ra>
